<compile_context>
chip_gen: v7x
topology: tpu7x:2x2x1
jax: 0.10.0
libtpu: 0.0.40
codegen_flags: <defaults>
</compile_context>

<pallas_src>
import jax
import jax.numpy as jnp
from jax.experimental import pallas as pl
from jax.experimental.pallas import tpu as pltpu


def _round_up(x, m):
    return (x + m - 1) // m * m


def attention_lstm_kernel(x_ref, w_ref, u_row_ref, o_ref):
    # x_ref: (TB, S, H) input dtype; w_ref: (H, H) bf16; u_row_ref: (1, H) f32
    # o_ref: (TB, H) input dtype
    TB, S, H = x_ref.shape
    x = x_ref[...]                                        # (TB, S, H)

    # ---- u = tanh(x @ W): bf16 MXU operands, f32 accumulation --------------
    # (TB, S) -> (TB*S) merge is a pure layout no-op when S % 8 == 0.
    x2 = x.reshape(TB * S, H).astype(jnp.bfloat16)
    u = jnp.tanh(
        jnp.dot(x2, w_ref[...], preferred_element_type=jnp.float32)
    )                                                     # (TB*S, H) f32

    # ---- attention logits: VPU multiply + lane reduction (no MXU matvec) ---
    u_row = u_row_ref[...]                                # (1, H) f32
    logits = jnp.sum(u * u_row, axis=-1, keepdims=True)   # (TB*S, 1) f32
    logits = logits.reshape(TB, S, 1)                     # seq on sublanes

    # ---- numerically-stable softmax over the sequence (sublane reductions) -
    logits = logits - jnp.max(logits, axis=1, keepdims=True)
    e = jnp.exp(logits)
    denom = jnp.sum(e, axis=1, keepdims=True)             # (TB, 1, 1)
    score = e * pl.reciprocal(denom, approx=True)         # (TB, S, 1)

    # ---- context: VPU broadcast-multiply + seq (sublane) reduction ---------
    ctx = jnp.sum(x.astype(jnp.float32) * score, axis=1)  # (TB, H) f32

    # ---- relu -> relu -> sigmoid (single relu is equivalent) ---------------
    o_ref[...] = jax.nn.sigmoid(jnp.maximum(ctx, 0.0)).astype(o_ref.dtype)


def _vmem_budget_bytes():
    # Per-generation VMEM budget: 3/4 of physical capacity
    # (~48 MiB on v7x's 64 MiB, ~96 MiB on v5e/v6e's 128 MiB).
    try:
        cap = int(pltpu.get_tpu_info().vmem_capacity_bytes)
    except Exception:
        cap = 64 * 1024 * 1024            # v7x-safe fallback
    return (cap * 3) // 4


def _pick_batch_tile(B, S, H, x_itemsize, vmem_budget):
    # Rough per-batch-row VMEM cost: double-buffered x block + in-kernel bf16
    # matmul copy + f32 u / x intermediates + small per-row vectors.
    per_row = S * H * (2 * x_itemsize + 2 + 4 + 4) + 16 * H
    fixed = 2 * H * H * 2 + 8 * H + (2 << 20)             # weights + headroom
    tb = max(8, (max(vmem_budget - fixed, 0) // max(per_row, 1)) // 8 * 8)
    tb = min(tb, 512)
    if B > 8:
        # Keep >= 2 grid steps whenever the batch allows (2 TCs on v7x).
        tb = min(tb, _round_up(-(-B // 2), 8))
    if tb >= B:
        return B                           # one full-batch block, no padding
    return max(8, (tb // 8) * 8)           # sublane-aligned tile of the batch


def attention_lstm_forward(lstm_out, w_omega, u_omega, *,
                           batch_tile=None, vmem_limit_bytes=None):
    """Fused attention + relu + sigmoid.  lstm_out: (B, S, H)."""
    B, S, H = lstm_out.shape
    x_itemsize = jnp.dtype(lstm_out.dtype).itemsize

    if vmem_limit_bytes is None:
        vmem_limit_bytes = _vmem_budget_bytes()
    TB = batch_tile if batch_tile is not None else _pick_batch_tile(
        B, S, H, x_itemsize, vmem_limit_bytes)

    # Weights: bf16 for the MXU (tiny, cast once in the wrapper); u_omega as a
    # lane-dense (1, H) f32 row for the in-kernel VPU logit reduction.
    w_bf16 = w_omega.astype(jnp.bfloat16)
    u_row = u_omega.reshape(1, H).astype(jnp.float32)

    return pl.pallas_call(
        attention_lstm_kernel,
        out_shape=jax.ShapeDtypeStruct((B, H), lstm_out.dtype),
        grid_spec=pltpu.PrefetchScalarGridSpec(
            num_scalar_prefetch=0,
            grid=(pl.cdiv(B, TB),),
            in_specs=[
                pl.BlockSpec((TB, S, H), lambda b: (b, 0, 0)),
                # Grid-invariant weights: constant block index -> fetched once.
                pl.BlockSpec((H, H), lambda b: (0, 0)),
                pl.BlockSpec((1, H), lambda b: (0, 0)),
            ],
            out_specs=pl.BlockSpec((TB, H), lambda b: (b, 0)),
        ),
        compiler_params=pltpu.CompilerParams(
            # Batch tiles are independent -> shard across TCs on v7x megacore.
            dimension_semantics=("parallel",),
            vmem_limit_bytes=int(vmem_limit_bytes),
        ),
    )(lstm_out, w_bf16, u_row)


def reference_forward(lstm_out, w_omega, u_omega):
    # Pure-JAX f32 reference mirroring the PyTorch module.
    u = jnp.tanh(jnp.einsum("bsh,hk->bsk", lstm_out, w_omega))
    att = jnp.einsum("bsh,ho->bso", u, u_omega)           # (B, S, 1)
    att_score = jax.nn.softmax(att, axis=1)
    ctx = jnp.sum(lstm_out * att_score, axis=1)            # (B, H)
    out = jax.nn.relu(ctx)
    out = jax.nn.relu(out)
    return jax.nn.sigmoid(out)


if __name__ == "__main__":
    B, S, H = 2, 8, 32  # batch, seq, hidden

    key = jax.random.PRNGKey(0)
    k_x, k_w, k_u = jax.random.split(key, 3)

    lstm_out = jax.random.normal(k_x, (B, S, H), dtype=jnp.float32)
    # nn.init.uniform_(-0.1, 0.1) equivalents, deterministic
    w_omega = jax.random.uniform(k_w, (H, H), minval=-0.1, maxval=0.1,
                                 dtype=jnp.float32)
    u_omega = jax.random.uniform(k_u, (H, 1), minval=-0.1, maxval=0.1,
                                 dtype=jnp.float32)

    out = attention_lstm_forward(lstm_out, w_omega, u_omega)
    out = jax.block_until_ready(out)

    ref = reference_forward(lstm_out, w_omega, u_omega)
    assert out.shape == (B, H), out.shape
    # Tolerance covers the bf16 MXU matmul and the approximate (EUP)
    # reciprocal in the softmax; the reference is exact f32.
    err = float(jnp.max(jnp.abs(out - ref)))
    assert err < 2e-2, err

    print("KERNEL_OK")
</pallas_src>

<mosaic_0001>
module attributes {stable_mosaic.version = 11 : i64} {
  func.func @attention_lstm_kernel(%arg0: i32, %arg1: memref<2x8x32xf32, #tpu.memory_space<vmem>>, %arg2: memref<32x32xbf16, #tpu.memory_space<vmem>>, %arg3: memref<1x32xf32, #tpu.memory_space<vmem>>, %arg4: memref<2x32xf32, #tpu.memory_space<vmem>>) attributes {dimension_semantics = [#tpu.dimension_semantics<parallel>], iteration_bounds = array<i64: 1>, scalar_prefetch = 0 : i64, scratch_operands = 0 : i64, tpu.core_type = #tpu.core_type<tc>, window_params = [{transform_indices = @transform_0, window_bounds = array<i64: 2, 8, 32>}, {pipeline_mode = #tpu.pipeline_mode<synchronous>, transform_indices = @transform_1, window_bounds = array<i64: 32, 32>}, {pipeline_mode = #tpu.pipeline_mode<synchronous>, transform_indices = @transform_2, window_bounds = array<i64: 1, 32>}, {transform_indices = @transform_3, window_bounds = array<i64: 2, 32>}]} {
    %c0 = arith.constant 0 : index
    %c0_0 = arith.constant 0 : index
    %c0_1 = arith.constant 0 : index
    %0 = vector.load %arg1[%c0, %c0_0, %c0_1] : memref<2x8x32xf32, #tpu.memory_space<vmem>>, vector<2x8x32xf32>
    %1 = vector.shape_cast %0 : vector<2x8x32xf32> to vector<16x32xf32>
    %2 = arith.truncf %1 : vector<16x32xf32> to vector<16x32xbf16>
    %c0_2 = arith.constant 0 : index
    %c0_3 = arith.constant 0 : index
    %3 = vector.load %arg2[%c0_2, %c0_3] : memref<32x32xbf16, #tpu.memory_space<vmem>>, vector<32x32xbf16>
    %cst = arith.constant dense<0.000000e+00> : vector<16x32xf32>
    %4 = tpu.matmul %2, %3, %cst {dimension_numbers = #tpu.dot_dimension_numbers<[1], [0], [0], [1], [0, 0, 1, 1], [], []>} : vector<16x32xbf16>, vector<32x32xbf16>, vector<16x32xf32> -> vector<16x32xf32>
    %5 = math.tanh %4 : vector<16x32xf32>
    %c0_4 = arith.constant 0 : index
    %c0_5 = arith.constant 0 : index
    %6 = vector.load %arg3[%c0_4, %c0_5] : memref<1x32xf32, #tpu.memory_space<vmem>>, vector<1x32xf32>
    %7 = vector.broadcast %6 : vector<1x32xf32> to vector<16x32xf32>
    %8 = arith.mulf %5, %7 : vector<16x32xf32>
    %cst_6 = arith.constant dense<0.000000e+00> : vector<16xf32>
    %9 = vector.multi_reduction <add>, %8, %cst_6 [1] : vector<16x32xf32> to vector<16xf32>
    %10 = vector.shape_cast %9 : vector<16xf32> to vector<16x1xf32>
    %11 = vector.shape_cast %10 : vector<16x1xf32> to vector<2x8x1xf32>
    %cst_7 = arith.constant dense<0xFF800000> : vector<2x1xf32>
    %12 = vector.multi_reduction <maximumf>, %11, %cst_7 [1] : vector<2x8x1xf32> to vector<2x1xf32>
    %13 = vector.shape_cast %12 : vector<2x1xf32> to vector<2x1x1xf32>
    %14 = vector.broadcast %13 : vector<2x1x1xf32> to vector<2x8x1xf32>
    %15 = arith.subf %11, %14 : vector<2x8x1xf32>
    %16 = math.exp %15 : vector<2x8x1xf32>
    %cst_8 = arith.constant dense<0.000000e+00> : vector<2x1xf32>
    %17 = vector.multi_reduction <add>, %16, %cst_8 [1] : vector<2x8x1xf32> to vector<2x1xf32>
    %18 = vector.shape_cast %17 : vector<2x1xf32> to vector<2x1x1xf32>
    %19 = tpu.reciprocal %18 {approx = true} : vector<2x1x1xf32> -> vector<2x1x1xf32>
    %20 = vector.broadcast %19 : vector<2x1x1xf32> to vector<2x8x1xf32>
    %21 = arith.mulf %16, %20 : vector<2x8x1xf32>
    %22 = vector.broadcast %21 : vector<2x8x1xf32> to vector<2x8x32xf32>
    %23 = arith.mulf %0, %22 : vector<2x8x32xf32>
    %cst_9 = arith.constant dense<0.000000e+00> : vector<2x32xf32>
    %24 = vector.multi_reduction <add>, %23, %cst_9 [1] : vector<2x8x32xf32> to vector<2x32xf32>
    %cst_10 = arith.constant 0.000000e+00 : f32
    %25 = vector.broadcast %cst_10 : f32 to vector<2x32xf32>
    %26 = arith.maximumf %24, %25 : vector<2x32xf32>
    %27 = arith.negf %26 : vector<2x32xf32>
    %28 = math.exp %27 : vector<2x32xf32>
    %cst_11 = arith.constant 1.000000e+00 : f32
    %29 = vector.broadcast %cst_11 : f32 to vector<2x32xf32>
    %30 = arith.addf %29, %28 : vector<2x32xf32>
    %31 = arith.divf %29, %30 : vector<2x32xf32>
    %c0_12 = arith.constant 0 : index
    %c0_13 = arith.constant 0 : index
    %32 = vector.load %arg4[%c0_12, %c0_13] : memref<2x32xf32, #tpu.memory_space<vmem>>, vector<2x32xf32>
    tpu.vector_store %arg4[%c0_12, %c0_13], %31 {strides = array<i32>} : memref<2x32xf32, #tpu.memory_space<vmem>>, vector<2x32xf32>,
    return
  }
  func.func @transform_0(%arg0: i32) -> (i32, i32, i32) {
    %c0_i32 = arith.constant 0 : i32
    %c0_i32_0 = arith.constant 0 : i32
    %c0_i32_1 = arith.constant 0 : i32
    return %arg0, %c0_i32, %c0_i32_0 : i32, i32, i32
  }
  func.func @transform_1(%arg0: i32) -> (i32, i32) {
    %c0_i32 = arith.constant 0 : i32
    %c0_i32_0 = arith.constant 0 : i32
    %c0_i32_1 = arith.constant 0 : i32
    return %c0_i32, %c0_i32_0 : i32, i32
  }
  func.func @transform_2(%arg0: i32) -> (i32, i32) {
    %c0_i32 = arith.constant 0 : i32
    %c0_i32_0 = arith.constant 0 : i32
    %c0_i32_1 = arith.constant 0 : i32
    return %c0_i32, %c0_i32_0 : i32, i32
  }
  func.func @transform_3(%arg0: i32) -> (i32, i32) {
    %c0_i32 = arith.constant 0 : i32
    %c0_i32_0 = arith.constant 0 : i32
    return %arg0, %c0_i32 : i32, i32
  }
}

</mosaic_0001>

<bundles_post_ra>
// kernel: tpu_custom_call.1
= control target key start
LH: loop header
LB: loop body
LE: loop exit
PB: predicated region body
PF: predicated region fallthrough
CT: control target
= control target key end

     0   :  { %8 = vsyncpa [#allocation3], 0  ;;  %s409_s0 = inlined_call_operand.hbm [shape: f32[2,8,32], index: 0, kind: input, shape index: {}]   ;;  %s410_s1 = inlined_call_operand.hbm [shape: bf16[32,32], index: 1, kind: input, shape index: {}]   ;;  %s411_s2 = inlined_call_operand.vmem [shape: f32[1,32], index: 2, kind: input, shape index: {}]   ;;  %s412_s3 = inlined_call_operand.hbm [shape: f32[2,32], index: 3, kind: output, shape index: {}]  }
   0x1   :  { %9 = vsyncpa [#allocation6], 0 }
   0x2   :  { %10 = vsyncpa [#allocation4], 0  ;;  %s332_s12 = smov [#allocation2]   ;;  %s260_s16 = scalar_lea.hbm %s409_s0, 256 }
   0x3   :  { %s16_s13 = sshll.u32 %s332_s12, 4  ;;  %p261_p0 = scmp.ne.s32.totalorder %s409_s0, %s260_s16  ;;  %s17_s13 = int_to_ptr.vmem [resolvable:$true] %s16_s13 }
   0x4   :  { %p264_p1 = scmp.lt.u32.totalorder %s260_s16, %s409_s0 }
   0x6   :  { %p266_p2 = pnand %p264_p1, %p261_p0 }
   0x8   :  { %269 = shalt.err (!%p266_p2)
}
   0x9   :  { %s270_s21 = scalar_lea.vmem %s17_s13, 256  ;;  %p275_p4 = scmp.lt.s32.totalorder %s17_s13, %s17_s13 }
   0xa   :  { %p271_p3 = scmp.ne.s32.totalorder %s17_s13, %s270_s21  ;;  %p276_p5 = scmp.lt.s32.totalorder %s270_s21, %s270_s21 }
   0xc   :  { %p277_p6 = por %p276_p5, %p275_p4 }
   0xe   :  { %p278_p7 = pnand %p277_p6, %p271_p3 }
  0x10   :  { %281 = shalt.err (!%p278_p7)
}
  0x11   :  { %s333_s22 = smov 128   ;;  %s334_s23 = smov 8  }
  0x12   :  { %22 = dma.hbm_to_vmem [thread:$0]  %s409_s0, 256, %s17_s13, [#allocation3], %s333_s22, %s333_s22, %s334_s23  }
  0x13   :  { %s335_s26 = smov [#allocation5]   ;;  %s282_s30 = scalar_lea.hbm %s410_s1, 256 }
  0x14   :  { %s28_s27 = sshll.u32 %s335_s26, 4  ;;  %p283_p8 = scmp.ne.s32.totalorder %s410_s1, %s282_s30  ;;  %s29_s27 = int_to_ptr.vmem [resolvable:$true] %s28_s27 }
  0x15   :  { %p286_p9 = scmp.lt.u32.totalorder %s282_s30, %s410_s1 }
  0x17   :  { %p288_p10 = pnand %p286_p9, %p283_p8 }
  0x19   :  { %291 = shalt.err (!%p288_p10)
}
  0x1a   :  { %s292_s8 = scalar_lea.vmem %s29_s27, 256  ;;  %p297_p12 = scmp.lt.s32.totalorder %s29_s27, %s29_s27 }
  0x1b   :  { %p293_p11 = scmp.ne.s32.totalorder %s29_s27, %s292_s8  ;;  %p298_p13 = scmp.lt.s32.totalorder %s292_s8, %s292_s8 }
  0x1d   :  { %p299_p0 = por %p298_p13, %p297_p12 }
  0x1f   :  { %p300_p1 = pnand %p299_p0, %p293_p11 }
  0x21   :  { %303 = shalt.err (!%p300_p1)
}
  0x22   :  { %s336_s0 = smov 64   ;;  %s337_s9 = smov 4  }
  0x23   :  { %34 = dma.hbm_to_vmem [thread:$0]  %s410_s1, 256, %s29_s27, [#allocation6], %s336_s0, %s336_s0, %s337_s9  }
  0x24   :  { %326 = dma.done.wait [#allocation3], 256  }
  0x25   :  { %327 = vsyncadd [#allocation3], 4294967040 }
  0x26   :  { %328 = dma.done.wait [#allocation6], 256  }
  0x27   :  { %329 = vsyncadd [#allocation6], 4294967040  ;;  %v338_v0 = vmov 0.0   ;;  %vm339_vm0 = vmmov 0   ;;  %v238_v1 = vld [vmem:[#allocation5] sm:$0xff]   ;;  %v239_v2 = vld [vmem:[#allocation5 + $0x8] sm:$0xff]  }
  0x28   :  { %221 = vmatprep.subr.bf16.mxu0 %v338_v0  ;;  %225 = vmatprep.mubr.msk.bf16.mxu0 %vm339_vm0, %v338_v0  ;;  %v44_v3 = vld [vmem:[#allocation2] sm:$0xff]  ;;  %v385_v4 = vld [vmem:[#allocation2 + $0x8] sm:$0xff]  ;;  %vm63_vm1 = vcmask 261120   ;;  %vm191_vm2 = vcmask 1041409   ;;  %vm194_vm3 = vcmask 254976  }
  0x29   :  { %222 = vmatpush3.bf16.msra.mxu0 %v238_v1  ;;  %v46_v5 = vpack.c.bf16 %v385_v4, %v44_v3  ;;  %v215_v10 = vld [vmem:[%s411_s2] ss:$0 sm:$0xff]  ;;  %s340_s2 = smov [#allocation7]  }
  0x2a   :  { %223 = vmatprep.subr.bf16.mxu0 %v338_v0  ;;  %s202_s13 = sshll.u32 %s340_s2, 4  ;;  %s203_s13 = int_to_ptr.vmem [resolvable:$true] %s202_s13 }
  0x2b   :  { %s304_s14 = scalar_lea.vmem %s203_s13, 32  ;;  %p309_p3 = scmp.lt.s32.totalorder %s203_s13, %s203_s13 }
  0x2c   :  { %p305_p2 = scmp.ne.s32.totalorder %s203_s13, %s304_s14  ;;  %p310_p4 = scmp.lt.s32.totalorder %s304_s14, %s304_s14 }
  0x2d   :  { %224 = vmatpush3.bf16.msra.mxu0 %v239_v2 }
  0x2e   :  { %p311_p5 = por %p310_p4, %p309_p3 }
  0x30   :  { %226 = vmatmul.mubr.msk.bf16.vlgmr.msra.gmra.mrb[0].mxu0 %vm63_vm1, %v46_v5  ;;  %p312_p6 = pnand %p311_p5, %p305_p2 }
 0x103   :  { %v101_v6 = vpop.f32.mrb[0].mxu0 }
 0x104   :  { %240 = vtanh.f32 %v101_v6  ;;  %v227_v7 = vpop.f32.mrb[1].mxu0 }
 0x105   :  { %v104_v8 = vpop.f32.mrb[2].mxu0 }
 0x106   :  { %242 = vtanh.f32 %v104_v8  ;;  %v228_v9 = vpop.f32.mrb[3].mxu0 }
 0x10e   :  { %v241_v11 = vpop.eup %240 }
 0x10f   :  { %v117_v12 = vmul.f32 %v241_v11, %v215_v10 }
 0x110   :  { %v243_v13 = vpop.eup %242 }
 0x111   :  { %v119_v14 = vsel %vm63_vm1, %v117_v12, 0.0  ;;  %v118_v15 = vmul.f32 %v243_v13, %v215_v10 }
 0x112   :  { %120 = vadd.xlane.f32.xlu0 %v119_v14 }
 0x113   :  { %v122_v16 = vsel %vm63_vm1, %v118_v15, 0.0 }
 0x116   :  { %123 = vadd.xlane.f32.xlu0 %v122_v16 }
 0x19f   :  { %v121_v17 = vpop.xlane.xlu0 %120 }
 0x1a0   :  { %v125_v18 = vrot.slane %v121_v17, 4 }
 0x1a2   :  { %v126_v19 = vmax.f32 %v121_v17, %v125_v18 }
 0x1a3   :  { %v124_v20 = vpop.xlane.xlu0 %123 }
 0x1a4   :  { %v127_v21 = vrot.slane %v126_v19, 2  ;;  %v131_v22 = vrot.slane %v124_v20, 4 }
 0x1a6   :  { %v128_v23 = vmax.f32 %v126_v19, %v127_v21  ;;  %v132_v24 = vmax.f32 %v124_v20, %v131_v22 }
 0x1a8   :  { %v129_v25 = vrot.slane %v128_v23, 1  ;;  %v133_v26 = vrot.slane %v132_v24, 2 }
 0x1aa   :  { %v130_v27 = vmax.f32 %v128_v23, %v129_v25  ;;  %v134_v28 = vmax.f32 %v132_v24, %v133_v26 }
 0x1ac   :  { %v137_v29 = vsub.f32 %v121_v17, %v130_v27  ;;  %v135_v30 = vrot.slane %v134_v28, 1 }
 0x1ae   :  { %v139_v31 = vmul.f32 1.442695, %v137_v29  ;;  %v136_v32 = vmax.f32 %v134_v28, %v135_v30 }
 0x1b0   :  { %244 = vpow2.f32 %v139_v31  ;;  %v138_v33 = vsub.f32 %v124_v20, %v136_v32 }
 0x1b2   :  { %v141_v34 = vmul.f32 1.442695, %v138_v33 }
 0x1b4   :  { %246 = vpow2.f32 %v141_v34 }
 0x1ba   :  { %v245_v35 = vpop.eup %244 }
 0x1bb   :  { %v143_v36 = vrot.slane %v245_v35, 4 }
 0x1bd   :  { %v144_v37 = vadd.f32 %v245_v35, %v143_v36 }
 0x1be   :  { %v247_v38 = vpop.eup %246 }
 0x1bf   :  { %v145_v39 = vrot.slane %v144_v37, 2  ;;  %v149_v40 = vrot.slane %v247_v38, 4 }
 0x1c1   :  { %v146_v41 = vadd.f32 %v145_v39, %v144_v37  ;;  %v150_v42 = vadd.f32 %v247_v38, %v149_v40 }
 0x1c3   :  { %v147_v43 = vrot.slane %v146_v41, 1  ;;  %v151_v44 = vrot.slane %v150_v42, 2 }
 0x1c5   :  { %v148_v45 = vadd.f32 %v147_v43, %v146_v41  ;;  %v152_v46 = vadd.f32 %v151_v44, %v150_v42 }
 0x1c7   :  { %248 = vrcp.f32 %v148_v45  ;;  %v153_v47 = vrot.slane %v152_v46, 1 }
 0x1c9   :  { %v154_v48 = vadd.f32 %v153_v47, %v152_v46 }
 0x1cb   :  { %250 = vrcp.f32 %v154_v48 }
 0x1d1   :  { %v249_v49 = vpop.eup %248 }
 0x1d2   :  { %v157_v50 = vmul.f32 %v249_v49, %v245_v35 }
 0x1d4   :  { %v159_v51 = vmul.f32 %v157_v50, %v44_v3 }
 0x1d5   :  { %v251_v52 = vpop.eup %250 }
 0x1d6   :  { %v161_v53 = vsel %vm63_vm1, %v159_v51, 0.0  ;;  %v158_v54 = vmul.f32 %v251_v52, %v247_v38 }
 0x1d7   :  { %v162_v55 = vrot.slane %v161_v53, 4 }
 0x1d8   :  { %v160_v56 = vmul.f32 %v158_v54, %v385_v4 }
 0x1d9   :  { %v163_v57 = vadd.f32 %v162_v55, %v161_v53 }
 0x1da   :  { %v168_v58 = vsel %vm63_vm1, %v160_v56, 0.0 }
 0x1db   :  { %v164_v59 = vrot.slane %v163_v57, 2  ;;  %v169_v60 = vrot.slane %v168_v58, 4 }
 0x1dd   :  { %v170_v61 = vadd.f32 %v169_v60, %v168_v58  ;;  %v165_v62 = vadd.f32 %v164_v59, %v163_v57 }
 0x1df   :  { %v171_v63 = vrot.slane %v170_v61, 2  ;;  %v166_v0 = vrot.slane %v165_v62, 1 }
 0x1e1   :  { %v172_v1 = vadd.f32 %v171_v63, %v170_v61  ;;  %v167_v2 = vadd.f32 %v166_v0, %v165_v62 }
 0x1e3   :  { %v173_v5 = vrot.slane %v172_v1, 1  ;;  %v175_v3 = vmax.f32 %v167_v2, 0.0 }
 0x1e5   :  { %v174_v6 = vadd.f32 %v173_v5, %v172_v1  ;;  %v216_v7 = vmul.f32 -1.442695, %v175_v3 }
 0x1e7   :  { %v176_v8 = vmax.f32 %v174_v6, 0.0  ;;  %252 = vpow2.f32 %v216_v7 }
 0x1e9   :  { %v217_v9 = vmul.f32 -1.442695, %v176_v8 }
 0x1eb   :  { %254 = vpow2.f32 %v217_v9 }
 0x1f1   :  { %v253_v4 = vpop.eup %252 }
 0x1f2   :  { %v183_v10 = vadd.f32 1.0, %v253_v4 }
 0x1f4   :  { %256 = vrcp.f32 %v183_v10 }
 0x1f5   :  { %v255_v11 = vpop.eup %254 }
 0x1f6   :  { %v184_v12 = vadd.f32 1.0, %v255_v11 }
 0x1f8   :  { %258 = vrcp.f32 %v184_v12 }
 0x1fe   :  { %v257_v13 = vpop.eup %256 }
 0x202   :  { %v259_v14 = vpop.eup %258 }
 0x203   :  { %v192_v15 = vsel %vm191_vm2, %v259_v14, %v257_v13 }
 0x204   :  { %195 = vst.msk [vmem:[#allocation7] sm:$0x3] %vm194_vm3, %v192_v15 }
 0x205   :  { %315 = shalt.err (!%p312_p6)
}
 0x206   :  { %s316_s17 = scalar_lea.hbm %s412_s3, 32 }
 0x207   :  { %p317_p7 = scmp.ne.s32.totalorder %s412_s3, %s316_s17  ;;  %p320_p8 = scmp.lt.u32.totalorder %s316_s17, %s412_s3 }
 0x209   :  { %p322_p9 = pnand %p320_p8, %p317_p7 }
 0x20b   :  { %325 = shalt.err (!%p322_p9)
}
 0x20c   :  { %205 = dma.vmem_to_hbm [thread:$0]  %s203_s13, 32, %s412_s3, [#allocation4]  }
 0x20d   :  { %330 = dma.done.wait [#allocation4], 32  }
 0x20e   :  { %331 = vsyncadd [#allocation4], 4294967264 }
 0x20f   :  { %209 = vsyncpa [#allocation3], 1 }
 0x210   :  { %210 = vsyncpa [#allocation6], 1 }
 0x211   :  { %211 = vsyncpa [#allocation4], 1 }

</bundles_post_ra>
